<compile_context>
chip_gen: v7x
topology: tpu7x:2x2x1
jax: 0.10.0
libtpu: 0.0.40
codegen_flags: <defaults>
</compile_context>

<pallas_src>
import functools

import jax
import jax.numpy as jnp
from jax import lax
from jax.experimental import pallas as pl
from jax.experimental.pallas import tpu as pltpu

# ---- model dimensions (small, deterministic demo shapes) ---------------------
B = 2        # batch
T = 8        # sequence length
LATENT = 32  # latent noise dim
HIDDEN = 64  # generator hidden dim
C = 16       # generated feature channels
C_PAD = 128  # channel dim padded to one full lane width (unmasked stores)

TILE_R = 1024  # rows per grid step when B*T is large (amortizes ~0.35us/step)


def _round_up(x, m):
    return ((x + m - 1) // m) * m


def _gan_gen_kernel(z_ref,              # VMEM: [tile_r, LATENT] bf16
                    w1_ref, b1_ref,     # VMEM: [LATENT, HIDDEN] bf16, [1, HIDDEN] f32
                    w2_ref, b2_ref,     # VMEM: [HIDDEN, C_PAD] bf16,  [1, C_PAD] f32
                    len_ref,            # VMEM: [tile_r, 1] int32 (per-row length)
                    o_ref,              # VMEM: [tile_r, C_PAD] f32
                    *, tile_r, seq_len):
    # Linear -> ReLU (bf16 MXU operands, f32 accumulate, f32 elementwise)
    h = jnp.dot(z_ref[...], w1_ref[...], preferred_element_type=jnp.float32)
    h = jnp.maximum(h + b1_ref[...], 0.0)                        # [tile_r, HIDDEN] f32

    # Linear -> Tanh (re-cast activations to bf16 for the MXU only)
    y = jnp.dot(h.astype(jnp.bfloat16), w2_ref[...],
                preferred_element_type=jnp.float32)
    y = jnp.tanh(y + b2_ref[...])                                # [tile_r, C_PAD] f32

    # Length mask on a [tile_r, 1] column: global row r -> (b = r // T, t = r % T).
    local = lax.broadcasted_iota(jnp.int32, (tile_r, 1), 0)
    row = pl.program_id(0) * tile_r + local
    if (seq_len & (seq_len - 1)) == 0:        # static: T is a power of two
        t = row & (seq_len - 1)
    else:
        t = row % seq_len
    mask = t < len_ref[...]                                      # [tile_r, 1] bool
    o_ref[...] = jnp.where(mask, y, 0.0)                         # unmasked vst


def prepare_params(w1, b1, w2, b2):
    """One-time weight prep (hoisted out of the forward): pad w2/b2 channel dim
    to 128 lanes (padded cols are exact zeros -> tanh(0)=0) and cast MXU
    operands to bf16. Biases stay f32 for the VPU."""
    Hd, Cz = w2.shape
    w2p = jnp.zeros((Hd, C_PAD), jnp.float32).at[:, :Cz].set(w2)
    b2p = jnp.zeros((1, C_PAD), jnp.float32).at[:, :Cz].set(b2)
    return (w1.astype(jnp.bfloat16),
            b1.astype(jnp.float32),
            w2p.astype(jnp.bfloat16),
            b2p,
            Cz)


def gan_forward(z, lengths, prepared):
    """z: [B, T, LATENT] f32, lengths: [B] i32 -> [B, T, C] f32."""
    w1b, b1, w2pb, b2p, n_chan = prepared
    Bz, Tz, Lz = z.shape
    Hd = w1b.shape[1]
    rows = Bz * Tz

    # Row tiling: big tiles when rows are plentiful, shrink (multiple of 8) when tiny.
    tile_r = min(TILE_R, _round_up(rows, 8))
    rows_p = _round_up(rows, tile_r)
    grid = rows_p // tile_r

    # Wrapper-side layout plumbing only (no compute hoisted out of the kernel).
    z2d = z.reshape(rows, Lz).astype(jnp.bfloat16)
    len_row = jnp.repeat(lengths.astype(jnp.int32), Tz).reshape(rows, 1)
    if rows_p != rows:
        z2d = jnp.pad(z2d, ((0, rows_p - rows), (0, 0)))
        len_row = jnp.pad(len_row, ((0, rows_p - rows), (0, 0)))  # len 0 -> masked

    kernel = functools.partial(_gan_gen_kernel, tile_r=tile_r, seq_len=Tz)

    flops = 2 * rows_p * (Lz * Hd + Hd * C_PAD)
    bytes_accessed = (z2d.size * 2 + w1b.size * 2 + w2pb.size * 2
                      + b1.size * 4 + b2p.size * 4
                      + len_row.size * 4 + rows_p * C_PAD * 4)

    out = pl.pallas_call(
        kernel,
        out_shape=jax.ShapeDtypeStruct((rows_p, C_PAD), jnp.float32),
        grid=(grid,),
        in_specs=[
            pl.BlockSpec((tile_r, Lz), lambda i: (i, 0)),      # z rows (tiled)
            pl.BlockSpec(w1b.shape, lambda i: (0, 0)),          # weights resident
            pl.BlockSpec(b1.shape, lambda i: (0, 0)),
            pl.BlockSpec(w2pb.shape, lambda i: (0, 0)),
            pl.BlockSpec(b2p.shape, lambda i: (0, 0)),
            pl.BlockSpec((tile_r, 1), lambda i: (i, 0)),        # per-row lengths
        ],
        out_specs=pl.BlockSpec((tile_r, C_PAD), lambda i: (i, 0)),
        compiler_params=pltpu.CompilerParams(
            dimension_semantics=("parallel",)),                 # megacore on v7x
        cost_estimate=pl.CostEstimate(
            flops=flops,
            transcendentals=rows_p * C_PAD,
            bytes_accessed=bytes_accessed),
    )(z2d, w1b, b1, w2pb, b2p, len_row)

    return out[:rows, :n_chan].reshape(Bz, Tz, n_chan)


def init_params(key):
    k1, k2 = jax.random.split(key, 2)
    w1 = jax.random.normal(k1, (LATENT, HIDDEN), jnp.float32) * (2.0 / LATENT) ** 0.5
    b1 = jnp.zeros((1, HIDDEN), jnp.float32)
    w2 = jax.random.normal(k2, (HIDDEN, C), jnp.float32) * (2.0 / HIDDEN) ** 0.5
    b2 = jnp.zeros((1, C), jnp.float32)
    return w1, b1, w2, b2


def reference_forward(z, lengths, w1, b1, w2, b2):
    # Emulates the kernel's numerics: bf16 MXU operands, f32 accumulation,
    # f32 elementwise (bf16 x bf16 products are exact in f32).
    zb = z.astype(jnp.bfloat16).astype(jnp.float32)
    w1b = w1.astype(jnp.bfloat16).astype(jnp.float32)
    w2b = w2.astype(jnp.bfloat16).astype(jnp.float32)
    h = jnp.maximum(jnp.einsum("btl,lh->bth", zb, w1b) + b1[0], 0.0)
    hb = h.astype(jnp.bfloat16).astype(jnp.float32)
    y = jnp.tanh(jnp.einsum("bth,hc->btc", hb, w2b) + b2[0])
    mask = jnp.arange(z.shape[1])[None, :, None] < lengths[:, None, None]
    return jnp.where(mask, y, 0.0)


if __name__ == "__main__":
    key = jax.random.PRNGKey(0)
    kz, kp = jax.random.split(key)

    z = jax.random.normal(kz, (B, T, LATENT), jnp.float32)
    lengths = jnp.array([T, T // 2], dtype=jnp.int32)
    w1, b1, w2, b2 = init_params(kp)

    prepared = prepare_params(w1, b1, w2, b2)   # one-time pad + bf16 cast
    out = gan_forward(z, lengths, prepared)
    out = jax.block_until_ready(out)

    ref = reference_forward(z, lengths, w1, b1, w2, b2)
    assert out.shape == (B, T, C)
    assert jnp.allclose(out, ref, atol=1e-4, rtol=1e-4)

    # TODO(synk): training_loop / save_parameters / load_parameters / device /
    # param_path are host-side checkpoint & optimization utilities with no
    # kernel equivalent.
    print("KERNEL_OK")
</pallas_src>

<mosaic_0001>
module attributes {stable_mosaic.version = 11 : i64} {
  func.func @_gan_gen_kernel(%arg0: i32, %arg1: memref<16x32xbf16, #tpu.memory_space<vmem>>, %arg2: memref<32x64xbf16, #tpu.memory_space<vmem>>, %arg3: memref<1x64xf32, #tpu.memory_space<vmem>>, %arg4: memref<64x128xbf16, #tpu.memory_space<vmem>>, %arg5: memref<1x128xf32, #tpu.memory_space<vmem>>, %arg6: memref<16x1xi32, #tpu.memory_space<vmem>>, %arg7: memref<16x128xf32, #tpu.memory_space<vmem>>) attributes {dimension_semantics = [#tpu.dimension_semantics<parallel>], iteration_bounds = array<i64: 1>, scalar_prefetch = 0 : i64, scratch_operands = 0 : i64, tpu.core_type = #tpu.core_type<tc>, window_params = [{transform_indices = @transform_0, window_bounds = array<i64: 16, 32>}, {pipeline_mode = #tpu.pipeline_mode<synchronous>, transform_indices = @transform_1, window_bounds = array<i64: 32, 64>}, {pipeline_mode = #tpu.pipeline_mode<synchronous>, transform_indices = @transform_2, window_bounds = array<i64: 1, 64>}, {pipeline_mode = #tpu.pipeline_mode<synchronous>, transform_indices = @transform_3, window_bounds = array<i64: 64, 128>}, {pipeline_mode = #tpu.pipeline_mode<synchronous>, transform_indices = @transform_4, window_bounds = array<i64: 1, 128>}, {transform_indices = @transform_5, window_bounds = array<i64: 16, 1>}, {transform_indices = @transform_6, window_bounds = array<i64: 16, 128>}]} {
    %c0 = arith.constant 0 : index
    %c0_0 = arith.constant 0 : index
    %0 = vector.load %arg1[%c0, %c0_0] : memref<16x32xbf16, #tpu.memory_space<vmem>>, vector<16x32xbf16>
    %c0_1 = arith.constant 0 : index
    %c0_2 = arith.constant 0 : index
    %1 = vector.load %arg2[%c0_1, %c0_2] : memref<32x64xbf16, #tpu.memory_space<vmem>>, vector<32x64xbf16>
    %cst = arith.constant dense<0.000000e+00> : vector<16x64xf32>
    %2 = tpu.matmul %0, %1, %cst {dimension_numbers = #tpu.dot_dimension_numbers<[1], [0], [0], [1], [0, 0, 1, 1], [], []>} : vector<16x32xbf16>, vector<32x64xbf16>, vector<16x64xf32> -> vector<16x64xf32>
    %c0_3 = arith.constant 0 : index
    %c0_4 = arith.constant 0 : index
    %3 = vector.load %arg3[%c0_3, %c0_4] : memref<1x64xf32, #tpu.memory_space<vmem>>, vector<1x64xf32>
    %4 = vector.broadcast %3 : vector<1x64xf32> to vector<16x64xf32>
    %5 = arith.addf %2, %4 : vector<16x64xf32>
    %cst_5 = arith.constant 0.000000e+00 : f32
    %6 = vector.broadcast %cst_5 : f32 to vector<16x64xf32>
    %7 = arith.maximumf %5, %6 : vector<16x64xf32>
    %8 = arith.truncf %7 : vector<16x64xf32> to vector<16x64xbf16>
    %c0_6 = arith.constant 0 : index
    %c0_7 = arith.constant 0 : index
    %9 = vector.load %arg4[%c0_6, %c0_7] : memref<64x128xbf16, #tpu.memory_space<vmem>>, vector<64x128xbf16>
    %cst_8 = arith.constant dense<0.000000e+00> : vector<16x128xf32>
    %10 = tpu.matmul %8, %9, %cst_8 {dimension_numbers = #tpu.dot_dimension_numbers<[1], [0], [0], [1], [0, 0, 1, 1], [], []>} : vector<16x64xbf16>, vector<64x128xbf16>, vector<16x128xf32> -> vector<16x128xf32>
    %c0_9 = arith.constant 0 : index
    %c0_10 = arith.constant 0 : index
    %11 = vector.load %arg5[%c0_9, %c0_10] : memref<1x128xf32, #tpu.memory_space<vmem>>, vector<1x128xf32>
    %12 = vector.broadcast %11 : vector<1x128xf32> to vector<16x128xf32>
    %13 = arith.addf %10, %12 : vector<16x128xf32>
    %14 = math.tanh %13 : vector<16x128xf32>
    %15 = tpu.iota {dimensions = array<i32: 0>} : vector<16x1xi32>
    %c16_i32 = arith.constant 16 : i32
    %16 = arith.muli %arg0, %c16_i32 : i32
    %17 = vector.broadcast %16 : i32 to vector<16x1xi32>
    %18 = arith.addi %17, %15 : vector<16x1xi32>
    %c7_i32 = arith.constant 7 : i32
    %19 = vector.broadcast %c7_i32 : i32 to vector<16x1xi32>
    %20 = arith.andi %18, %19 : vector<16x1xi32>
    %c0_11 = arith.constant 0 : index
    %c0_12 = arith.constant 0 : index
    %21 = vector.load %arg6[%c0_11, %c0_12] : memref<16x1xi32, #tpu.memory_space<vmem>>, vector<16x1xi32>
    %22 = arith.cmpi slt, %20, %21 : vector<16x1xi32>
    %cst_13 = arith.constant 0.000000e+00 : f32
    %23 = vector.shape_cast %22 : vector<16x1xi1> to vector<16x1xi1>
    %24 = vector.broadcast %23 : vector<16x1xi1> to vector<16x128xi1>
    %25 = vector.broadcast %cst_13 : f32 to vector<16x128xf32>
    %26 = arith.select %24, %14, %25 : vector<16x128xi1>, vector<16x128xf32>
    %c0_14 = arith.constant 0 : index
    %c0_15 = arith.constant 0 : index
    %27 = vector.load %arg7[%c0_14, %c0_15] : memref<16x128xf32, #tpu.memory_space<vmem>>, vector<16x128xf32>
    tpu.vector_store %arg7[%c0_14, %c0_15], %26 {strides = array<i32>} : memref<16x128xf32, #tpu.memory_space<vmem>>, vector<16x128xf32>,
    return
  }
  func.func @transform_0(%arg0: i32) -> (i32, i32) {
    %c0_i32 = arith.constant 0 : i32
    %c0_i32_0 = arith.constant 0 : i32
    return %arg0, %c0_i32 : i32, i32
  }
  func.func @transform_1(%arg0: i32) -> (i32, i32) {
    %c0_i32 = arith.constant 0 : i32
    %c0_i32_0 = arith.constant 0 : i32
    %c0_i32_1 = arith.constant 0 : i32
    return %c0_i32, %c0_i32_0 : i32, i32
  }
  func.func @transform_2(%arg0: i32) -> (i32, i32) {
    %c0_i32 = arith.constant 0 : i32
    %c0_i32_0 = arith.constant 0 : i32
    %c0_i32_1 = arith.constant 0 : i32
    return %c0_i32, %c0_i32_0 : i32, i32
  }
  func.func @transform_3(%arg0: i32) -> (i32, i32) {
    %c0_i32 = arith.constant 0 : i32
    %c0_i32_0 = arith.constant 0 : i32
    %c0_i32_1 = arith.constant 0 : i32
    return %c0_i32, %c0_i32_0 : i32, i32
  }
  func.func @transform_4(%arg0: i32) -> (i32, i32) {
    %c0_i32 = arith.constant 0 : i32
    %c0_i32_0 = arith.constant 0 : i32
    %c0_i32_1 = arith.constant 0 : i32
    return %c0_i32, %c0_i32_0 : i32, i32
  }
  func.func @transform_5(%arg0: i32) -> (i32, i32) {
    %c0_i32 = arith.constant 0 : i32
    %c0_i32_0 = arith.constant 0 : i32
    return %arg0, %c0_i32 : i32, i32
  }
  func.func @transform_6(%arg0: i32) -> (i32, i32) {
    %c0_i32 = arith.constant 0 : i32
    %c0_i32_0 = arith.constant 0 : i32
    return %arg0, %c0_i32 : i32, i32
  }
}

</mosaic_0001>

<bundles_post_ra>
// kernel: tpu_custom_call.1
= control target key start
LH: loop header
LB: loop body
LE: loop exit
PB: predicated region body
PF: predicated region fallthrough
CT: control target
= control target key end

     0   :  { %11 = vsyncpa [#allocation3], 0  ;;  %s494_s0 = inlined_call_operand.hbm [shape: bf16[16,32], index: 0, kind: input, shape index: {}]   ;;  %s495_s1 = inlined_call_operand.vmem [shape: bf16[32,64], index: 1, kind: input, shape index: {}]   ;;  %s496_s2 = inlined_call_operand.vmem [shape: f32[1,64], index: 2, kind: input, shape index: {}]   ;;  %s497_s3 = inlined_call_operand.hbm [shape: bf16[64,128], index: 3, kind: input, shape index: {}]   ;;  %s498_s4 = inlined_call_operand.vmem [shape: f32[1,128], index: 4, kind: input, shape index: {}]   ;;  %s499_s5 = inlined_call_operand.vmem [shape: s32[16,1], index: 5, kind: input, shape index: {}]   ;;  %s500_s6 = inlined_call_operand.hbm [shape: f32[16,128], index: 6, kind: output, shape index: {}]  }
   0x1   :  { %12 = vsyncpa [#allocation6], 0 }
   0x2   :  { %13 = vsyncpa [#allocation4], 0  ;;  %s395_s21 = smov [#allocation2]   ;;  %s323_s25 = scalar_lea.hbm %s494_s0, 128 }
   0x3   :  { %s19_s22 = sshll.u32 %s395_s21, 4  ;;  %p324_p0 = scmp.ne.s32.totalorder %s494_s0, %s323_s25  ;;  %s20_s22 = int_to_ptr.vmem [resolvable:$true] %s19_s22 }
   0x4   :  { %p327_p1 = scmp.lt.u32.totalorder %s323_s25, %s494_s0 }
   0x6   :  { %p329_p2 = pnand %p327_p1, %p324_p0 }
   0x8   :  { %332 = shalt.err (!%p329_p2)
}
   0x9   :  { %s333_s30 = scalar_lea.vmem %s20_s22, 128  ;;  %p338_p4 = scmp.lt.s32.totalorder %s20_s22, %s20_s22 }
   0xa   :  { %p334_p3 = scmp.ne.s32.totalorder %s20_s22, %s333_s30  ;;  %p339_p5 = scmp.lt.s32.totalorder %s333_s30, %s333_s30 }
   0xc   :  { %p340_p6 = por %p339_p5, %p338_p4 }
   0xe   :  { %p341_p7 = pnand %p340_p6, %p334_p3 }
  0x10   :  { %344 = shalt.err (!%p341_p7)
}
  0x11   :  { %s396_s7 = smov 64   ;;  %s397_s8 = smov 4  }
  0x12   :  { %25 = dma.hbm_to_vmem [thread:$0]  %s494_s0, 128, %s20_s22, [#allocation3], %s396_s7, %s396_s7, %s397_s8  }
  0x13   :  { %s398_s11 = smov [#allocation5]   ;;  %s345_s15 = scalar_lea.hbm %s497_s3, 512 }
  0x14   :  { %s35_s12 = sshll.u32 %s398_s11, 4  ;;  %p346_p8 = scmp.ne.s32.totalorder %s497_s3, %s345_s15  ;;  %s36_s12 = int_to_ptr.vmem [resolvable:$true] %s35_s12 }
  0x15   :  { %p349_p9 = scmp.lt.u32.totalorder %s345_s15, %s497_s3 }
  0x17   :  { %p351_p10 = pnand %p349_p9, %p346_p8 }
  0x19   :  { %354 = shalt.err (!%p351_p10)
}
  0x1a   :  { %s355_s20 = scalar_lea.vmem %s36_s12, 512  ;;  %p360_p12 = scmp.lt.s32.totalorder %s36_s12, %s36_s12 }
  0x1b   :  { %p356_p11 = scmp.ne.s32.totalorder %s36_s12, %s355_s20  ;;  %p361_p13 = scmp.lt.s32.totalorder %s355_s20, %s355_s20 }
  0x1d   :  { %p362_p0 = por %p361_p13, %p360_p12 }
  0x1f   :  { %p363_p1 = pnand %p362_p0, %p356_p11 }
  0x21   :  { %366 = shalt.err (!%p363_p1)
}
  0x22   :  { %41 = dma.hbm_to_vmem [thread:$0]  %s497_s3, 512, %s36_s12, [#allocation6], %s396_s7, %s396_s7, %s397_s8  }
  0x23   :  { %389 = dma.done.wait [#allocation3], 128  }
  0x24   :  { %390 = vsyncadd [#allocation3], 4294967168 }
  0x25   :  { %391 = dma.done.wait [#allocation6], 512  }
  0x26   :  { %392 = vsyncadd [#allocation6], 4294966784  ;;  %v399_v0 = vmov 0.0   ;;  %vm400_vm0 = vmmov 0   ;;  %v312_v1 = vld [vmem:[%s495_s1] sm:$0xff]   ;;  %v313_v2 = vld [vmem:[%s495_s1 + $0x8] sm:$0xff]   ;;  %v217_v8 = vlaneseq }
  0x27   :  { %281 = vmatprep.subr.bf16.mxu0 %v399_v0  ;;  %285 = vmatprep.mubr.msk.bf16.mxu0 %vm400_vm0, %v399_v0  ;;  %v315_v3 = vld [vmem:[#allocation5] sm:$0xff]   ;;  %v314_v4 = vld [vmem:[#allocation2] sm:$0xff]   ;;  %v316_v5 = vld [vmem:[#allocation5 + $0x8] sm:$0xff]   ;;  %vm83_vm1 = vcmask 261120   ;;  %v401_v9 = vmov 0   ;;  %vm170_vm4 = vcmask 523264  }
  0x28   :  { %289 = vmatprep.subr.bf16.mxu1 %v399_v0  ;;  %297 = vmatprep.mubr.msk.bf16.mxu1 %vm400_vm0, %v399_v0  ;;  %v317_v6 = vld [vmem:[#allocation5 + $0x10] sm:$0xff]   ;;  %v318_v7 = vld [vmem:[#allocation5 + $0x18] sm:$0xff]   ;;  %v218_v10 = vshrl.u32 %v217_v8, 7  ;;  %v227_v14 = vld [vmem:[%s499_s5 + $0x8] sm:$0xff] }
  0x29   :  { %282 = vmatpush3.bf16.msra.mxu0 %v312_v1  ;;  %290 = vmatpush3.bf16.msra.mxu1 %v315_v3  ;;  %v226_v11 = vld [vmem:[%s499_s5] sm:$0xff] }
  0x2a   :  { %283 = vmatprep.subr.bf16.mxu0 %v399_v0  ;;  %291 = vmatprep.subr.bf16.mxu1 %v399_v0  ;;  %v224_v12 = vand.u32 7, %v218_v10  ;;  %v219_v13 = vadd.s32 8, %v218_v10  ;;  %v262_v18 = vld [vmem:[%s496_s2] ss:$0 sm:$0xff]  ;;  %s402_s2 = smov [#allocation7]  }
  0x2b   :  { %311 = vset.pattern.permute.xlu0 %v401_v9  ;;  %v267_v28 = vld [vmem:[%s498_s4] ss:$0 sm:$0xff]  ;;  %s249_s7 = sshll.u32 %s402_s2, 4  ;;  %s250_s7 = int_to_ptr.vmem [resolvable:$true] %s249_s7 }
  0x2c   :  { %vm228_vm2 = vcmp.lt.s32.totalorder %v224_v12, %v226_v11  ;;  %v225_v15 = vand.u32 7, %v219_v13  ;;  %s367_s4 = scalar_lea.vmem %s250_s7, 256  ;;  %p372_p3 = scmp.lt.s32.totalorder %s250_s7, %s250_s7 }
  0x2d   :  { %284 = vmatpush3.bf16.msra.mxu0 %v313_v2  ;;  %292 = vmatpush3.bf16.msra.mxu1 %v316_v5  ;;  %v230_v16 = vsel %vm228_vm2, 1, %v401_v9  ;;  %p368_p2 = scmp.ne.s32.totalorder %s250_s7, %s367_s4  ;;  %p373_p4 = scmp.lt.s32.totalorder %s367_s4, %s367_s4 }
  0x2e   :  { %293 = vmatprep.subr.bf16.mxu1 %v399_v0  ;;  %233 = vperm.xlu0 %311, %v230_v16   ;;  %vm229_vm3 = vcmp.lt.s32.totalorder %v225_v15, %v227_v14 }
  0x2f   :  { %v231_v17 = vsel %vm229_vm3, 1, %v401_v9  ;;  %p374_p5 = por %p373_p4, %p372_p3 }
  0x30   :  { %286 = vmatmul.mubr.msk.bf16.vlgmr.msra.gmra.mrb[0].mxu0 %vm83_vm1, %v314_v4 }
  0x31   :  { %294 = vmatpush3.bf16.msra.mxu1 %v317_v6  ;;  %p375_p6 = pnand %p374_p5, %p368_p2 }
  0x32   :  { %295 = vmatprep.subr.bf16.mxu1 %v399_v0  ;;  %236 = vperm.xlu0 %311, %v231_v17  }
  0x35   :  { %296 = vmatpush3.bf16.msra.mxu1 %v318_v7 }
  0xad   :  { %v234_v35 = vpop.permute.xlu0 %233 }
  0xae   :  { %vm238_vm5 = vcmp.eq.s32.totalorder %v234_v35, 1 }
  0xb1   :  { %v237_v36 = vpop.permute.xlu0 %236 }
  0xb2   :  { %vm239_vm6 = vcmp.eq.s32.totalorder %v237_v36, 1 }
 0x103   :  { %v121_v19 = vpop.f32.mrb[0].mxu0 }
 0x104   :  { %v122_v20 = vadd.f32 %v262_v18, %v121_v19  ;;  %v287_v21 = vpop.f32.mrb[1].mxu0 }
 0x105   :  { %v124_v22 = vpop.f32.mrb[2].mxu0 }
 0x106   :  { %v125_v23 = vadd.f32 %v262_v18, %v124_v22  ;;  %v288_v24 = vpop.f32.mrb[3].mxu0  ;;  %v128_v25 = vmax.f32 %v122_v20, 0.0 }
 0x108   :  { %v129_v26 = vmax.f32 %v125_v23, 0.0 }
 0x10a   :  { %v130_v27 = vpack.c.bf16 %v129_v26, %v128_v25 }
 0x10c   :  { %298 = vmatmul.mubr.msk.bf16.vlgmr.msra.gmra.mrb[0].mxu1 %vm170_vm4, %v130_v27 }
 0x1df   :  { %v208_v29 = vpop.f32.mrb[0].mxu1 }
 0x1e0   :  { %v209_v30 = vadd.f32 %v267_v28, %v208_v29  ;;  %v299_v31 = vpop.f32.mrb[1].mxu1 }
 0x1e1   :  { %v211_v32 = vpop.f32.mrb[2].mxu1 }
 0x1e2   :  { %319 = vtanh.f32 %v209_v30  ;;  %v212_v33 = vadd.f32 %v267_v28, %v211_v32  ;;  %v300_v34 = vpop.f32.mrb[3].mxu1 }
 0x1e4   :  { %321 = vtanh.f32 %v212_v33 }
 0x1ec   :  { %v320_v37 = vpop.eup %319 }
 0x1ed   :  { %v240_v38 = vsel %vm238_vm5, %v320_v37, 0.0 }
 0x1ee   :  { %v322_v39 = vpop.eup %321  ;;  %242 = vst [vmem:[#allocation7] sm:$0xff] %v240_v38 }
 0x1ef   :  { %v241_v40 = vsel %vm239_vm6, %v322_v39, 0.0 }
 0x1f0   :  { %243 = vst [vmem:[#allocation7 + $0x8] sm:$0xff] %v241_v40 }
 0x1f1   :  { %378 = shalt.err (!%p375_p6)
}
 0x1f2   :  { %s379_s10 = scalar_lea.hbm %s500_s6, 256 }
 0x1f3   :  { %p380_p7 = scmp.ne.s32.totalorder %s500_s6, %s379_s10  ;;  %p383_p8 = scmp.lt.u32.totalorder %s379_s10, %s500_s6 }
 0x1f5   :  { %p385_p9 = pnand %p383_p8, %p380_p7 }
 0x1f7   :  { %388 = shalt.err (!%p385_p9)
}
 0x1f8   :  { %s403_s15 = smov 128   ;;  %s404_s16 = smov 8  }
 0x1f9   :  { %255 = dma.vmem_to_hbm [thread:$0]  %s250_s7, 256, %s500_s6, [#allocation4], %s403_s15, %s403_s15, %s404_s16  }
 0x1fa   :  { %393 = dma.done.wait [#allocation4], 256  }
 0x1fb   :  { %394 = vsyncadd [#allocation4], 4294967040 }
 0x1fc   :  { %259 = vsyncpa [#allocation3], 1 }
 0x1fd   :  { %260 = vsyncpa [#allocation6], 1 }
 0x1fe   :  { %261 = vsyncpa [#allocation4], 1 }

</bundles_post_ra>
